<compile_context>
chip_gen: v7x
topology: tpu7x:2x2x1
jax: 0.10.0
libtpu: 0.0.40
codegen_flags: <defaults>
</compile_context>

<pallas_src>
import functools

import jax
import jax.numpy as jnp
from jax.experimental import pallas as pl
from jax.experimental.pallas import tpu as pltpu

# ----------------------------- configuration ---------------------------------
IN_CHANNELS = 4
CHANNEL_SPAN = 1            # hidden_channels = in_channels * channel_span
EXPANSION = 4               # Bottleneck.expansion
KERNEL_SIZE = 3
STRIDE = 1
BN_EPS = 1e-5

HIDDEN = int(IN_CHANNELS * CHANNEL_SPAN)
OUT_CHANNELS = HIDDEN * EXPANSION

_SUBLANE = 8                # f32 sublane tile


def _round_up(v, m):
    return (v + m - 1) // m * m


# ----------------------------- fused Pallas kernel ----------------------------
def _bottleneck_kernel(x_ref, mask_ref, wp_ref, o_ref, *,
                       ksize, wpad, n_center, ext,
                       cin, ch, chp, cout,
                       c_w1, c_w3, c_wsc, c_s1, c_b1, c_b2, c_b3, c_bsc):
    """Whole Bottleneck block for one image, channels on sublanes / pixels on lanes.

    x_ref:    (Cin, E)     zero-extended, zero-padded flat pixels of one image
    mask_ref: (1, E)       1.0 on real pixels, 0.0 on pad / halo positions
    wp_ref:   (R, ncols)   single packed constant: all BN-folded weights + biases
    o_ref:    (Cout, P)    output at every padded pixel (wrapper keeps the interior)
    """
    x = x_ref[...]                                            # (Cin, E)
    mask = mask_ref[...]                                      # (1, E)

    k2 = ksize * ksize * chp
    w2cat = wp_ref[0:ch, 0:k2]                                # (Ch,  k*k*ChP)  bn3-folded
    w1 = wp_ref[0:chp, c_w1:c_w1 + cin]                       # (ChP, Cin)      bn2-folded
    w3 = wp_ref[0:cout, c_w3:c_w3 + ch]                       # (Cout, Ch)
    wsc = wp_ref[0:cout, c_wsc:c_wsc + cin]                   # (Cout, Cin)     bn_sc-folded
    s1 = wp_ref[0:cin, c_s1:c_s1 + 1]                         # (Cin, 1)
    b1 = wp_ref[0:cin, c_b1:c_b1 + 1]
    b2 = wp_ref[0:chp, c_b2:c_b2 + 1]
    b3 = wp_ref[0:ch, c_b3:c_b3 + 1]
    bsc = wp_ref[0:cout, c_bsc:c_bsc + 1]

    # norm1 + relu            (dropout = 0.0 -> identity, folded away)
    a = jnp.maximum(x * s1 + b1, 0.0)                         # (Cin, E)

    # conv1 (1x1) + norm2 + relu.  Rows ch..chp-1 of w1/b2 are zero, so the padded
    # channels of z are exactly zero after the ReLU.
    z = jnp.maximum(jnp.dot(w1, a, preferred_element_type=jnp.float32) + b2, 0.0)
    z = z * mask                                              # conv2 zero padding (ChP, E)

    # conv2 (kxk) as ONE im2col matmul: taps are static lane slices of the
    # register-resident z; each tap contributes exactly ChP=8 sublane rows so the
    # concat is tile-aligned.  (Outputs at halo positions wrap across rows and are
    # discarded by the wrapper — keep the flat-offset invariant in mind.)
    taps = [z[:, u * wpad + v:u * wpad + v + n_center]
            for u in range(ksize) for v in range(ksize)]
    zz = jnp.concatenate(taps, axis=0)                        # (k*k*ChP, P)

    # + norm3 + relu
    h = jnp.maximum(jnp.dot(w2cat, zz, preferred_element_type=jnp.float32) + b3, 0.0)

    # conv3 (1x1)  +  shortcut 1x1 conv + bn_sc on the centre pixel  +  residual add
    xc = x[:, ext:ext + n_center]                             # (Cin, P) centre pixels
    out = (jnp.dot(w3, h, preferred_element_type=jnp.float32)
           + jnp.dot(wsc, xc, preferred_element_type=jnp.float32)
           + bsc)
    o_ref[...] = out.astype(o_ref.dtype)                      # (Cout, P) lane-dense store


# ----------------------------- wrapper ----------------------------------------
def _bn_fold(gamma, beta, mean, var):
    scale = gamma / jnp.sqrt(var + BN_EPS)
    shift = beta - mean * scale
    return scale, shift


@functools.partial(jax.jit, static_argnames=("stride", "ksize"))
def bottleneck_forward(x_nchw, params, *, stride=STRIDE, ksize=KERNEL_SIZE):
    """Pallas implementation of Bottleneck.forward.  x_nchw: (N, Cin, H, W) f32."""
    if ksize % 2 != 1:
        raise ValueError("symmetric padding only matches PyTorch for odd kernel sizes")
    n, cin, h, w = x_nchw.shape
    p = (ksize - 1) // 2
    ho = (h + 2 * p - ksize) // stride + 1
    wo = (w + 2 * p - ksize) // stride + 1
    hp, wpad = h + 2 * p, w + 2 * p
    n_center = hp * wpad            # block evaluated at every padded position
    ext = p * (wpad + 1)            # flat halo so all k*k tap shifts stay in range
    e_rows = n_center + 2 * ext

    hid = params["w1"].shape[0]
    cout = params["w3"].shape[0]
    chp = _round_up(hid, _SUBLANE)  # pad conv1 output channels to the sublane tile

    # ---- one-time BN folding (f32) + packing into ONE constant buffer -------------
    s1, b1 = _bn_fold(*params["bn1"])
    s2, b2 = _bn_fold(*params["bn2"])
    s3, b3 = _bn_fold(*params["bn3"])
    ssc, bsc = _bn_fold(*params["bn_sc"])

    w1f = params["w1"][:, :, 0, 0] * s2[:, None]                     # (hid, cin)
    # OIHW -> (O, u, v, I), pad I -> chp, flatten taps tap-major / channel-minor
    w2t = jnp.transpose(params["w2"], (0, 2, 3, 1))                  # (hid, k, k, hid)
    w2t = jnp.pad(w2t, ((0, 0), (0, 0), (0, 0), (0, chp - hid)))
    w2cat = w2t.reshape(hid, ksize * ksize * chp) * s3[:, None]      # (hid, k*k*chp)
    w3m = params["w3"][:, :, 0, 0]                                   # (cout, hid)
    wscf = params["w_sc"][:, :, 0, 0] * ssc[:, None]                 # (cout, cin)

    k2 = ksize * ksize * chp
    c_w1, c_w3, c_wsc = k2, k2 + cin, k2 + cin + hid
    c_s1 = c_wsc + cin
    c_b1, c_b2, c_b3, c_bsc = c_s1 + 1, c_s1 + 2, c_s1 + 3, c_s1 + 4
    rows = max(cout, chp, cin)
    ncols = c_bsc + 1

    def place(buf, arr, c0):
        return buf.at[:arr.shape[0], c0:c0 + arr.shape[1]].set(arr)

    wpack = jnp.zeros((rows, ncols), jnp.float32)
    wpack = place(wpack, w2cat, 0)
    wpack = place(wpack, jnp.pad(w1f, ((0, chp - hid), (0, 0))), c_w1)
    wpack = place(wpack, w3m, c_w3)
    wpack = place(wpack, wscf, c_wsc)
    wpack = place(wpack, s1[:, None], c_s1)
    wpack = place(wpack, b1[:, None], c_b1)
    wpack = place(wpack, jnp.pad(b2, (0, chp - hid))[:, None], c_b2)
    wpack = place(wpack, b3[:, None], c_b3)
    wpack = place(wpack, bsc[:, None], c_bsc)

    # ---- layout glue: NCHW already has channels leading -> no transposes, two pads ----
    x_pad = jnp.pad(x_nchw, ((0, 0), (0, 0), (p, p), (p, p)))        # (n, cin, hp, wpad)
    x_ext = jnp.pad(x_pad.reshape(n, cin, n_center), ((0, 0), (0, 0), (ext, ext)))

    mask = jnp.pad(jnp.ones((h, w), jnp.float32), ((p, p), (p, p)))
    mask = jnp.pad(mask.reshape(1, n_center), ((0, 0), (ext, ext)))  # compile-time const

    kernel = functools.partial(
        _bottleneck_kernel, ksize=ksize, wpad=wpad, n_center=n_center, ext=ext,
        cin=cin, ch=hid, chp=chp, cout=cout,
        c_w1=c_w1, c_w3=c_w3, c_wsc=c_wsc, c_s1=c_s1,
        c_b1=c_b1, c_b2=c_b2, c_b3=c_b3, c_bsc=c_bsc)

    out = pl.pallas_call(
        kernel,
        out_shape=jax.ShapeDtypeStruct((n, cout, n_center), jnp.float32),
        grid=(n,),
        in_specs=[
            pl.BlockSpec((None, cin, e_rows), lambda b: (b, 0, 0)),   # x, per image
            pl.BlockSpec((1, e_rows), lambda b: (0, 0)),              # interior mask
            pl.BlockSpec((rows, ncols), lambda b: (0, 0)),            # packed weights
        ],
        out_specs=pl.BlockSpec((None, cout, n_center), lambda b: (b, 0, 0)),
        compiler_params=pltpu.CompilerParams(
            dimension_semantics=("parallel",)),
    )(x_ext, mask, wpack)

    # keep the (strided) interior = valid conv outputs; already NCHW, no transpose.
    out = out.reshape(n, cout, hp, wpad)
    out = out[:, :, p:p + (ho - 1) * stride + 1:stride,
              p:p + (wo - 1) * stride + 1:stride]
    return out


# ----------------------------- pure-JAX reference -----------------------------
def _conv_nchw(x, wgt, stride, pad):
    return jax.lax.conv_general_dilated(
        x, wgt, (stride, stride), [(pad, pad), (pad, pad)],
        dimension_numbers=("NCHW", "OIHW", "NCHW"))


def _bn_nchw(x, gamma, beta, mean, var):
    s = (gamma / jnp.sqrt(var + BN_EPS)).reshape(1, -1, 1, 1)
    b = (beta - mean * gamma / jnp.sqrt(var + BN_EPS)).reshape(1, -1, 1, 1)
    return x * s + b


def bottleneck_reference(x, params):
    p = (KERNEL_SIZE - 1) // 2
    y = jax.nn.relu(_bn_nchw(x, *params["bn1"]))
    y = _conv_nchw(y, params["w1"], 1, 0)
    y = jax.nn.relu(_bn_nchw(y, *params["bn2"]))
    y = _conv_nchw(y, params["w2"], STRIDE, p)
    y = jax.nn.relu(_bn_nchw(y, *params["bn3"]))
    y = _conv_nchw(y, params["w3"], 1, 0)
    sc = _bn_nchw(_conv_nchw(x, params["w_sc"], STRIDE, 0), *params["bn_sc"])
    return y + sc


# ----------------------------- parameter init ---------------------------------
def init_params(key):
    ks = jax.random.split(key, 12)

    def bn(k, c):
        k1, k2, k3, k4 = jax.random.split(k, 4)
        gamma = 1.0 + 0.1 * jax.random.normal(k1, (c,), jnp.float32)
        beta = 0.1 * jax.random.normal(k2, (c,), jnp.float32)
        mean = 0.1 * jax.random.normal(k3, (c,), jnp.float32)
        var = 1.0 + 0.1 * jax.random.uniform(k4, (c,), jnp.float32)
        return (gamma, beta, mean, var)

    return {
        "bn1": bn(ks[0], IN_CHANNELS),
        "w1": 0.1 * jax.random.normal(ks[1], (HIDDEN, IN_CHANNELS, 1, 1), jnp.float32),
        "bn2": bn(ks[2], HIDDEN),
        "w2": 0.1 * jax.random.normal(ks[3], (HIDDEN, HIDDEN, KERNEL_SIZE, KERNEL_SIZE), jnp.float32),
        "bn3": bn(ks[4], HIDDEN),
        "w3": 0.1 * jax.random.normal(ks[5], (OUT_CHANNELS, HIDDEN, 1, 1), jnp.float32),
        "w_sc": 0.1 * jax.random.normal(ks[6], (OUT_CHANNELS, IN_CHANNELS, 1, 1), jnp.float32),
        "bn_sc": bn(ks[7], OUT_CHANNELS),
    }


# ----------------------------------- main --------------------------------------
if __name__ == "__main__":
    key = jax.random.PRNGKey(0)
    kx, kp = jax.random.split(key)
    x = jax.random.normal(kx, (2, IN_CHANNELS, 16, 16), jnp.float32)   # NCHW, like PyTorch
    params = init_params(kp)

    out = jax.block_until_ready(bottleneck_forward(x, params))
    ref = jax.block_until_ready(bottleneck_reference(x, params))

    assert out.shape == ref.shape == (2, OUT_CHANNELS, 16, 16)
    err = float(jnp.max(jnp.abs(out - ref)))
    assert jnp.allclose(out, ref, rtol=1e-4, atol=1e-4), err

    print("KERNEL_OK")
</pallas_src>

<mosaic_0001>
module attributes {stable_mosaic.version = 11 : i64} {
  func.func @_bottleneck_kernel(%arg0: i32, %arg1: memref<1x4x362xf32, #tpu.memory_space<vmem>>, %arg2: memref<1x362xf32, #tpu.memory_space<vmem>>, %arg3: memref<16x89xf32, #tpu.memory_space<vmem>>, %arg4: memref<1x16x324xf32, #tpu.memory_space<vmem>>) attributes {dimension_semantics = [#tpu.dimension_semantics<parallel>], iteration_bounds = array<i64: 2>, scalar_prefetch = 0 : i64, scratch_operands = 0 : i64, tpu.core_type = #tpu.core_type<tc>, window_params = [{transform_indices = @transform_0, window_bounds = array<i64: 1, 4, 362>}, {pipeline_mode = #tpu.pipeline_mode<synchronous>, transform_indices = @transform_1, window_bounds = array<i64: 1, 362>}, {pipeline_mode = #tpu.pipeline_mode<synchronous>, transform_indices = @transform_2, window_bounds = array<i64: 16, 89>}, {transform_indices = @transform_3, window_bounds = array<i64: 1, 16, 324>}]} {
    %c0 = arith.constant 0 : index
    %c0_0 = arith.constant 0 : index
    %c0_1 = arith.constant 0 : index
    %0 = vector.load %arg1[%c0, %c0_0, %c0_1] : memref<1x4x362xf32, #tpu.memory_space<vmem>>, vector<1x4x362xf32>
    %1 = vector.shape_cast %0 : vector<1x4x362xf32> to vector<4x362xf32>
    %c0_2 = arith.constant 0 : index
    %c0_3 = arith.constant 0 : index
    %2 = vector.load %arg2[%c0_2, %c0_3] : memref<1x362xf32, #tpu.memory_space<vmem>>, vector<1x362xf32>
    %c0_4 = arith.constant 0 : index
    %c0_5 = arith.constant 0 : index
    %3 = vector.load %arg3[%c0_4, %c0_5] : memref<16x89xf32, #tpu.memory_space<vmem>>, vector<4x72xf32>
    %c0_6 = arith.constant 0 : index
    %c72 = arith.constant 72 : index
    %4 = vector.load %arg3[%c0_6, %c72] : memref<16x89xf32, #tpu.memory_space<vmem>>, vector<8x4xf32>
    %c0_7 = arith.constant 0 : index
    %c76 = arith.constant 76 : index
    %5 = vector.load %arg3[%c0_7, %c76] : memref<16x89xf32, #tpu.memory_space<vmem>>, vector<16x4xf32>
    %c0_8 = arith.constant 0 : index
    %c80 = arith.constant 80 : index
    %6 = vector.load %arg3[%c0_8, %c80] : memref<16x89xf32, #tpu.memory_space<vmem>>, vector<16x4xf32>
    %c0_9 = arith.constant 0 : index
    %c84 = arith.constant 84 : index
    %7 = vector.load %arg3[%c0_9, %c84] : memref<16x89xf32, #tpu.memory_space<vmem>>, vector<4x1xf32>
    %c0_10 = arith.constant 0 : index
    %c85 = arith.constant 85 : index
    %8 = vector.load %arg3[%c0_10, %c85] : memref<16x89xf32, #tpu.memory_space<vmem>>, vector<4x1xf32>
    %c0_11 = arith.constant 0 : index
    %c86 = arith.constant 86 : index
    %9 = vector.load %arg3[%c0_11, %c86] : memref<16x89xf32, #tpu.memory_space<vmem>>, vector<8x1xf32>
    %c0_12 = arith.constant 0 : index
    %c87 = arith.constant 87 : index
    %10 = vector.load %arg3[%c0_12, %c87] : memref<16x89xf32, #tpu.memory_space<vmem>>, vector<4x1xf32>
    %c0_13 = arith.constant 0 : index
    %c88 = arith.constant 88 : index
    %11 = vector.load %arg3[%c0_13, %c88] : memref<16x89xf32, #tpu.memory_space<vmem>>, vector<16x1xf32>
    %12 = vector.broadcast %7 : vector<4x1xf32> to vector<4x362xf32>
    %13 = arith.mulf %1, %12 : vector<4x362xf32>
    %14 = vector.broadcast %8 : vector<4x1xf32> to vector<4x362xf32>
    %15 = arith.addf %13, %14 : vector<4x362xf32>
    %cst = arith.constant 0.000000e+00 : f32
    %16 = vector.broadcast %cst : f32 to vector<4x362xf32>
    %17 = arith.maximumf %15, %16 : vector<4x362xf32>
    %cst_14 = arith.constant dense<0.000000e+00> : vector<8x362xf32>
    %18 = tpu.matmul %4, %17, %cst_14 {dimension_numbers = #tpu.dot_dimension_numbers<[1], [0], [0], [1], [0, 0, 1, 1], [], []>} : vector<8x4xf32>, vector<4x362xf32>, vector<8x362xf32> -> vector<8x362xf32>
    %19 = vector.broadcast %9 : vector<8x1xf32> to vector<8x362xf32>
    %20 = arith.addf %18, %19 : vector<8x362xf32>
    %cst_15 = arith.constant 0.000000e+00 : f32
    %21 = vector.broadcast %cst_15 : f32 to vector<8x362xf32>
    %22 = arith.maximumf %20, %21 : vector<8x362xf32>
    %23 = vector.broadcast %2 : vector<1x362xf32> to vector<8x362xf32>
    %24 = arith.mulf %22, %23 : vector<8x362xf32>
    %25 = vector.extract_strided_slice %24 {offsets = [0, 0], sizes = [8, 324], strides = [1, 1]} : vector<8x362xf32> to vector<8x324xf32>
    %26 = vector.extract_strided_slice %24 {offsets = [0, 1], sizes = [8, 324], strides = [1, 1]} : vector<8x362xf32> to vector<8x324xf32>
    %27 = vector.extract_strided_slice %24 {offsets = [0, 2], sizes = [8, 324], strides = [1, 1]} : vector<8x362xf32> to vector<8x324xf32>
    %28 = vector.extract_strided_slice %24 {offsets = [0, 18], sizes = [8, 324], strides = [1, 1]} : vector<8x362xf32> to vector<8x324xf32>
    %29 = vector.extract_strided_slice %24 {offsets = [0, 19], sizes = [8, 324], strides = [1, 1]} : vector<8x362xf32> to vector<8x324xf32>
    %30 = vector.extract_strided_slice %24 {offsets = [0, 20], sizes = [8, 324], strides = [1, 1]} : vector<8x362xf32> to vector<8x324xf32>
    %31 = vector.extract_strided_slice %24 {offsets = [0, 36], sizes = [8, 324], strides = [1, 1]} : vector<8x362xf32> to vector<8x324xf32>
    %32 = vector.extract_strided_slice %24 {offsets = [0, 37], sizes = [8, 324], strides = [1, 1]} : vector<8x362xf32> to vector<8x324xf32>
    %33 = vector.extract_strided_slice %24 {offsets = [0, 38], sizes = [8, 324], strides = [1, 1]} : vector<8x362xf32> to vector<8x324xf32>
    %34 = tpu.concatenate %25, %26, %27, %28, %29, %30, %31, %32, %33 in 0 : vector<8x324xf32>, vector<8x324xf32>, vector<8x324xf32>, vector<8x324xf32>, vector<8x324xf32>, vector<8x324xf32>, vector<8x324xf32>, vector<8x324xf32>, vector<8x324xf32> -> vector<72x324xf32>
    %cst_16 = arith.constant dense<0.000000e+00> : vector<4x324xf32>
    %35 = tpu.matmul %3, %34, %cst_16 {dimension_numbers = #tpu.dot_dimension_numbers<[1], [0], [0], [1], [0, 0, 1, 1], [], []>} : vector<4x72xf32>, vector<72x324xf32>, vector<4x324xf32> -> vector<4x324xf32>
    %36 = vector.broadcast %10 : vector<4x1xf32> to vector<4x324xf32>
    %37 = arith.addf %35, %36 : vector<4x324xf32>
    %cst_17 = arith.constant 0.000000e+00 : f32
    %38 = vector.broadcast %cst_17 : f32 to vector<4x324xf32>
    %39 = arith.maximumf %37, %38 : vector<4x324xf32>
    %40 = vector.extract_strided_slice %1 {offsets = [0, 19], sizes = [4, 324], strides = [1, 1]} : vector<4x362xf32> to vector<4x324xf32>
    %cst_18 = arith.constant dense<0.000000e+00> : vector<16x324xf32>
    %41 = tpu.matmul %5, %39, %cst_18 {dimension_numbers = #tpu.dot_dimension_numbers<[1], [0], [0], [1], [0, 0, 1, 1], [], []>} : vector<16x4xf32>, vector<4x324xf32>, vector<16x324xf32> -> vector<16x324xf32>
    %cst_19 = arith.constant dense<0.000000e+00> : vector<16x324xf32>
    %42 = tpu.matmul %6, %40, %cst_19 {dimension_numbers = #tpu.dot_dimension_numbers<[1], [0], [0], [1], [0, 0, 1, 1], [], []>} : vector<16x4xf32>, vector<4x324xf32>, vector<16x324xf32> -> vector<16x324xf32>
    %43 = arith.addf %41, %42 : vector<16x324xf32>
    %44 = vector.broadcast %11 : vector<16x1xf32> to vector<16x324xf32>
    %45 = arith.addf %43, %44 : vector<16x324xf32>
    %c0_20 = arith.constant 0 : index
    %c0_21 = arith.constant 0 : index
    %c0_22 = arith.constant 0 : index
    %46 = vector.load %arg4[%c0_20, %c0_21, %c0_22] : memref<1x16x324xf32, #tpu.memory_space<vmem>>, vector<1x16x324xf32>
    %47 = vector.shape_cast %46 : vector<1x16x324xf32> to vector<16x324xf32>
    %48 = vector.shape_cast %45 : vector<16x324xf32> to vector<1x16x324xf32>
    tpu.vector_store %arg4[%c0_20, %c0_21, %c0_22], %48 {strides = array<i32>} : memref<1x16x324xf32, #tpu.memory_space<vmem>>, vector<1x16x324xf32>,
    return
  }
  func.func @transform_0(%arg0: i32) -> (i32, i32, i32) {
    %c0_i32 = arith.constant 0 : i32
    %c0_i32_0 = arith.constant 0 : i32
    %c0_i32_1 = arith.constant 0 : i32
    return %arg0, %c0_i32, %c0_i32_0 : i32, i32, i32
  }
  func.func @transform_1(%arg0: i32) -> (i32, i32) {
    %c0_i32 = arith.constant 0 : i32
    %c0_i32_0 = arith.constant 0 : i32
    %c0_i32_1 = arith.constant 0 : i32
    return %c0_i32, %c0_i32_0 : i32, i32
  }
  func.func @transform_2(%arg0: i32) -> (i32, i32) {
    %c0_i32 = arith.constant 0 : i32
    %c0_i32_0 = arith.constant 0 : i32
    %c0_i32_1 = arith.constant 0 : i32
    return %c0_i32, %c0_i32_0 : i32, i32
  }
  func.func @transform_3(%arg0: i32) -> (i32, i32, i32) {
    %c0_i32 = arith.constant 0 : i32
    %c0_i32_0 = arith.constant 0 : i32
    %c0_i32_1 = arith.constant 0 : i32
    return %arg0, %c0_i32, %c0_i32_0 : i32, i32, i32
  }
}

</mosaic_0001>

<bundles_post_ra>
// kernel: bottleneck_forward.1
= control target key start
LH: loop header
LB: loop body
LE: loop exit
PB: predicated region body
PF: predicated region fallthrough
CT: control target
= control target key end

     0   :  { %s1302_s12 = smov 0   ;;  %s1432_s0 = inlined_call_operand.vmem [shape: f32[2,4,362], index: 0, kind: input, shape index: {}]   ;;  %s1433_s1 = inlined_call_operand.vmem [shape: f32[1,362], index: 1, kind: input, shape index: {}]   ;;  %s1434_s2 = inlined_call_operand.vmem [shape: f32[16,89], index: 2, kind: input, shape index: {}]   ;;  %s1435_s3 = inlined_call_operand.vmem [shape: f32[2,16,324], index: 3, kind: output, shape index: {}]  }
   0x1 LB: > { %s1062_s13 = sadd.s32 4294967295, %s1260_s12   ;;  %p1066_p0 = scmp.ge.s32.totalorder %s1260_s12, 1  ;;  %s1260_s12 = sphi %s1302_s12, %s13_s12  }
   0x2   : > { %p137_p1 = scmp.lt.s32.totalorder %s1260_s12, 3 }
   0x4   : > { %p138_p2 = pnand %p1066_p0, %p137_p1 }
   0x5   : > { %v1313_v0 = vld [vmem:[%s1434_s2] sm:$0xf] (!%p138_p2)  ;;  %v1262_v2 = vmov (!%p138_p2), 84   ;;  %s1263_s18 = smov (!%p138_p2), 56   ;;  %v1264_v3 = vmov (!%p138_p2), 85   ;;  %v1265_v4 = vmov (!%p138_p2), 0.0   ;;  %v184_v8 = vlaneseq (!%p138_p2) }
   0x6   : > { %141 = sbr.rel (%p138_p2) target bundleno = 959 (0x3bf), region = 32  ;;  %v1318_v1 = vld [vmem:[%s1434_s2] sm:$0xff] (!%p138_p2)  ;;  %1212 = vset.pattern.permute.xlu0 (!%p138_p2), %v1262_v2  ;;  %1110 = vmatprep.subr.mxu1 (!%p138_p2), %v1265_v4  ;;  %vm1266_vm0 = vmmov (!%p138_p2), 0   ;;  %v1267_v5 = vmov (!%p138_p2), 86   ;;  %p161_p3 = scmp.lt.s32.totalorder (!%p138_p2), %s1062_s13, 1  ;;  %vm219_vm1 = vcmask (!%p138_p2), 1043456  }
   0x7   : > { %211 = vrot.lane.b32.xlu1 (!%p138_p2), %v1318_v1, %s1263_s18  ;;  %179 = vperm.xlu0 (!%p138_p2), %1212, %v1313_v0   ;;  %v1268_v6 = vmov (!%p138_p2), 839922192   ;;  %v185_v10 = vshrl.u32 (!%p138_p2), %v184_v8, 7  ;;  %vm216_vm2 = vcmask (!%p138_p2), 31744   ;;  %v173_v29 = vld [vmem:[%s1433_s1] sm:$0x7] (!%p138_p2) }
   0x8   : > { %290 = vmatprep.mubr.f32.mxu0 (!%p138_p2), %v1265_v4  ;;  %1112 = vmatprep.mubr.msk.f32.mxu1 (!%p138_p2), %vm1266_vm0, %v1265_v4  ;;  %v182_v7 = vunpack.c.l.s4 (!%p138_p2), %v1268_v6  ;;  %s1269_s25 = smov (!%p138_p2), 126   ;;  %s1270_s26 = smov (!%p138_p2), 127   ;;  %v1273_v45 = vmov (!%p138_p2), 0.0|0.0   ;;  %v1277_v49 = vmov (!%p138_p2), 87   ;;  %v1373_v51 = vld [vmem:[%s1434_s2 + $0x8] sm:$0xff] (!%p138_p2)  ;;  %vm398_vm3 = vcmask (!%p138_p2), 1039360  }
   0x9   : > { %1214 = vset.pattern.permute.xlu1 (!%p138_p2), %v1267_v5  ;;  %v373_v27 = vsub.s32 (!%p138_p2), 0, %v185_v10  ;;  %v381_v36 = vsub.s32 (!%p138_p2), 2, %v185_v10  ;;  %v377_v40 = vsub.s32 (!%p138_p2), 1, %v185_v10  ;;  %s1271_s27 = smov (!%p138_p2), 109   ;;  %s1272_s28 = smov (!%p138_p2), 110   ;;  %vm422_vm4 = vcmask (!%p138_p2), 900096  }
   0xa   : > { %v183_v9 = vunpack.c.0.s8 (!%p138_p2), %v182_v7  ;;  %s1274_s29 = smov (!%p138_p2), 92   ;;  %s1275_s30 = smov (!%p138_p2), 108   ;;  %vm410_vm5 = vcmask (!%p138_p2), 1031168   ;;  %vm446_vm6 = vcmask (!%p138_p2), 883712   ;;  %vm434_vm7 = vcmask (!%p138_p2), 891904  }
   0xb   : > { %1213 = vset.pattern.permute.xlu0 (!%p138_p2), %v1264_v3  ;;  %208 = vperm.xlu1 (!%p138_p2), %1214, %v1318_v1   ;;  %v374_v33 = vrot.slane (!%p138_p2), %v173_v29, %v373_v27  ;;  %v382_v42 = vrot.slane (!%p138_p2), %v173_v29, %v381_v36  ;;  %v378_v44 = vrot.slane (!%p138_p2), %v173_v29, %v377_v40  ;;  %s1276_s4 = smov (!%p138_p2), 91   ;;  %s1278_s5 = smov (!%p138_p2), 90   ;;  %vm470_vm8 = vcmask (!%p138_p2), 744448  }
   0xc   : > { %192 = vperm.xlu0 (!%p138_p2), %1213, %v1313_v0   ;;  %v186_v11 = vsub.s32 (!%p138_p2), %v183_v9, %v185_v10  ;;  %s1279_s8 = smov (!%p138_p2), 48   ;;  %s1280_s9 = smov (!%p138_p2), 52   ;;  %vm458_vm9 = vcmask (!%p138_p2), 752640   ;;  %vm482_vm10 = vcmask (!%p138_p2), 736256   ;;  %vm492_vm11 = vcmask (!%p138_p2), 588800  }
   0xd   : > { %s1437_s13 = smov (!%p161_p3, %s1062_s13), 1  ;;  %vm1002_vm12 = vcmask 556032  }
   0xe   : > { %s1182_s19 = smul.u32 12, %s1437_s13 }
   0xf   : > { %s1183_s10 = smul.u32 48, %s1437_s13 }
  0x10   : > { %s165_s22 = scalar_lea.vmem %s1432_s0, %s1182_s19  ;;  %1250 = vset.pattern.permute.xlu0 %v1277_v49 }
  0x11   : > { %v1334_v14 = vld [vmem:[%s165_s22] sm:$0xff]  ;;  %v1336_v15 = vld [vmem:[%s165_s22 + $0x8] sm:$0xf]  ;;  %s170_s15 = scalar_lea.vmem %s1435_s3, %s1183_s10 }
  0x12   : > { %v646_v50 = vcombine.high %v1334_v14, %v1334_v14 }
  0x79   : > { %v212_v24 = vpop.permute.xlu1 %211 }
  0x86   : > { %v180_v12 = vpop.permute.xlu0 %179 }
  0x87   : > { %v187_v13 = vrot.slane %v180_v12, %v186_v11 }
  0x89   : > { %v189_v17 = vmul.f32 %v187_v13, %v1334_v14  ;;  %v190_v18 = vmul.f32 %v187_v13, %v1336_v15 }
  0x8a   : > { %v209_v28 = vpop.permute.xlu1 %208 }
  0x8b   : > { %v193_v16 = vpop.permute.xlu0 %192 }
  0x8c   : > { %v200_v19 = vrot.slane %v193_v16, %v186_v11 }
  0x8e   : > { %v202_v20 = vadd.f32 %v200_v19, %v189_v17  ;;  %v203_v21 = vadd.f32 %v200_v19, %v190_v18 }
  0x90   : > { %v204_v22 = vmax.f32 %v202_v20, 0.0  ;;  %v205_v23 = vmax.f32 %v203_v21, 0.0 }
  0x92   : > { %1111 = vmatpush3.msk.msra.mxu1 %vm219_vm1, %v205_v23  ;;  %v215_v25 = vcombine.high %v204_v22, %v204_v22 }
  0x93   : > { %1113 = vmatmul.mubr.msk.f32.vlgmr.msra.gmra.mrb[0].mxu1 %vm216_vm2, %v212_v24  ;;  %1162 = vmatprep.subr.bf16.mxu1 %v1273_v45 }
  0x94   : > { %1069 = vmatprep.subr.msk.mxu0 %vm219_vm1, %v215_v25  ;;  %1133 = vmatprep.mubr.msk.f32.mxu1 %vm1266_vm0, %v1265_v4 }
  0x95   : > { %1070 = vmatpush1.msk.msra.mxu0 %vm219_vm1, %v204_v22 }
  0x96   : > { %1071 = vmatmul.mubr.msk.f32.vlgmr.msra.gmra.mrb[0].mxu0 %vm216_vm2, %v212_v24 }
  0x97   : > { %559 = vmatprep.mubr.f32.mxu0 %v1265_v4 }
 0x166   : > { %v363_v26 = vpop.f32.mrb[0].mxu1 }
 0x167   : > { %v1114_v30 = vpop.f32.mrb[1].mxu1  ;;  %v364_v37 = vadd.f32 %v363_v26, %v209_v28 }
 0x169   : > { %v292_v31 = vpop.f32.mrb[0].mxu0  ;;  %v369_v41 = vmax.f32 %v364_v37, 0.0 }
 0x16a   : > { %v293_v32 = vadd.f32 %v292_v31, %v209_v28  ;;  %v294_v34 = vpop.f32.mrb[1].mxu0 }
 0x16b   : > { %v295_v39 = vadd.f32 %v294_v34, %v209_v28  ;;  %v388_v46 = vmul.f32 %v382_v42, %v369_v41 }
 0x16c   : > { %v367_v35 = vmax.f32 %v293_v32, 0.0 }
 0x16d   : > { %v368_v43 = vmax.f32 %v295_v39, 0.0 }
 0x16e   : > { %v1351_v38 = vmul.f32 %v374_v33, %v367_v35 }
 0x16f   : > { %v387_v47 = vmul.f32 %v378_v44, %v368_v43 }
 0x170   : > { %404 = vrot.lane.b32.xlu1 %v1351_v38, %s1269_s25  ;;  %392 = vrot.lane.b32.xlu0 %v1351_v38, %s1270_s26 }
 0x171   : > { %v1215_v48 = vpack.i.bf16 %v388_v46, %v387_v47 }
 0x174   : > { %428 = vrot.lane.b32.xlu1 %v1351_v38, %s1271_s27  ;;  %416 = vrot.lane.b32.xlu0 %v1351_v38, %s1272_s28 }
 0x178   : > { %452 = vrot.lane.b32.xlu1 %v1351_v38, %s1274_s29  ;;  %440 = vrot.lane.b32.xlu0 %v1351_v38, %s1275_s30 }
 0x17c   : > { %1216 = vrot.lane.b32.xlu1 %v1215_v48, %s1270_s26  ;;  %1226 = vrot.lane.b32.xlu0 %v1215_v48, %s1272_s28 }
 0x180   : > { %1221 = vrot.lane.b32.xlu1 %v1215_v48, %s1269_s25  ;;  %1236 = vrot.lane.b32.xlu0 %v1215_v48, %s1275_s30 }
 0x184   : > { %1231 = vrot.lane.b32.xlu1 %v1215_v48, %s1271_s27  ;;  %1246 = vrot.lane.b32.xlu0 %v1215_v48, %s1276_s4 }
 0x188   : > { %1241 = vrot.lane.b32.xlu1 %v1215_v48, %s1274_s29  ;;  %464 = vrot.lane.b32.xlu0 %v1351_v38, %s1276_s4 }
 0x18c   : > { %478 = vrot.lane.b32.xlu1 %v387_v47, %s1278_s5  ;;  %480 = vrot.lane.b32.xlu0 %v388_v46, %s1278_s5 }
 0x190   : > { %476 = vrot.lane.b32.xlu1 %v1351_v38, %s1278_s5  ;;  %489 = vperm.xlu0 %1250, %v1313_v0  }
 0x194   : > { %649 = vrot.lane.b32.xlu1 %v646_v50, %s1271_s27  ;;  %647 = vrot.lane.b32.xlu0 %v1334_v14, %s1271_s27 }
 0x198   : > { %651 = vrot.lane.b32.xlu1 %v1336_v15, %s1271_s27  ;;  %642 = vrot.lane.b32.xlu0 %v1373_v51, %s1279_s8 }
 0x19c   : > { %640 = vrot.lane.b32.xlu1 %v1318_v1, %s1279_s8  ;;  %819 = vrot.lane.b32.xlu0 %v1373_v51, %s1280_s9 }
 0x1a0   : > { %817 = vrot.lane.b32.xlu1 %v1318_v1, %s1280_s9 }
 0x1e2   : > { %v405_v52 = vpop.permute.xlu1 %404  ;;  %v393_v53 = vpop.permute.xlu0 %392 }
 0x1e6   : > { %v429_v54 = vpop.permute.xlu1 %428  ;;  %v417_v55 = vpop.permute.xlu0 %416 }
 0x1ea   : > { %v1381_v56 = vpop.permute.xlu1 %452  ;;  %v441_v57 = vpop.permute.xlu0 %440 }
 0x1ee   : > { %v1217_v58 = vpop.permute.xlu1 %1216  ;;  %v1227_v59 = vpop.permute.xlu0 %1226 }
 0x1ef   : > { %v1219_v60 = vunpack.i.h.bf16 %v1217_v58  ;;  %v1218_v61 = vunpack.i.l.bf16 %v1217_v58  ;;  %v1229_v62 = vunpack.i.h.bf16 %v1227_v59  ;;  %v1228_v63 = vunpack.i.l.bf16 %v1227_v59 }
 0x1f0   : > { %v1281_v59 = vmov 88  }
 0x1f1   : > { %v1163_v2 = vpack.c.bf16 %v1219_v60, %v388_v46  ;;  %v399_v3 = vsel %vm398_vm3, %v393_v53, %v1218_v61  ;;  %v400_v5 = vsel %vm398_vm3, %v1218_v61, %v1219_v60  ;;  %v423_v12 = vsel %vm422_vm4, %v417_v55, %v1228_v63  ;;  %1251 = vset.pattern.permute.xlu1 %v1281_v59 }
 0x1f2   : > { %v1148_v6 = vpack.c.bf16 %v399_v3, %v1351_v38  ;;  %v1222_v7 = vpop.permute.xlu1 %1221  ;;  %v1237_v8 = vpop.permute.xlu0 %1236  ;;  %v1146_v9 = vpack.c.bf16 %v400_v5, %v387_v47  ;;  %v424_v14 = vsel %vm422_vm4, %v1228_v63, %v1229_v62  ;;  %1252 = vset.pattern.permute.xlu0 %v1281_v59  ;;  %987 = vperm.xlu1 %1251, %v1318_v1  }
 0x1f3   : > { %v1224_v10 = vunpack.i.h.bf16 %v1222_v7  ;;  %v1223_v11 = vunpack.i.l.bf16 %v1222_v7  ;;  %1164 = vmatpush3.bf16.msra.mxu1 %v1163_v2  ;;  %v1238_v13 = vunpack.i.l.bf16 %v1237_v8  ;;  %v1239_v17 = vunpack.i.h.bf16 %v1237_v8  ;;  %991 = vperm.xlu0 %1252, %v1373_v51  }
 0x1f4   : > { %1147 = vmatprep.subr.bf16.mxu0 %v1146_v9  ;;  %1165 = vmatprep.subr.bf16.mxu1 %v1273_v45 }
 0x1f5   : > { %v411_v15 = vsel %vm410_vm5, %v405_v52, %v1223_v11  ;;  %v1166_v16 = vpack.c.bf16 %v1229_v62, %v1224_v10  ;;  %1149 = vmatpush1.bf16.msra.mxu0 %v1148_v6  ;;  %v412_v18 = vsel %vm410_vm5, %v1223_v11, %v1224_v10  ;;  %v447_v25 = vsel %vm446_vm6, %v441_v57, %v1238_v13 }
 0x1f6   : > { %v1152_v19 = vpack.c.bf16 %v423_v12, %v411_v15  ;;  %v1232_v20 = vpop.permute.xlu1 %1231  ;;  %v1247_v21 = vpop.permute.xlu0 %1246  ;;  %v1150_v22 = vpack.c.bf16 %v424_v14, %v412_v18  ;;  %v448_v31 = vsel %vm446_vm6, %v1238_v13, %v1239_v17 }
 0x1f7   : > { %v1234_v23 = vunpack.i.h.bf16 %v1232_v20  ;;  %v1233_v24 = vunpack.i.l.bf16 %v1232_v20  ;;  %1167 = vmatpush3.bf16.msra.mxu1 %v1166_v16  ;;  %v1249_v26 = vunpack.i.h.bf16 %v1247_v21  ;;  %v1248_v27 = vunpack.i.l.bf16 %v1247_v21 }
 0x1f8   : > { %1151 = vmatprep.subr.bf16.mxu0 %v1150_v22  ;;  %1168 = vmatprep.subr.bf16.mxu1 %v1273_v45 }
 0x1f9   : > { %v435_v28 = vsel %vm434_vm7, %v429_v54, %v1233_v24  ;;  %v1169_v29 = vpack.c.bf16 %v1239_v17, %v1234_v23  ;;  %1153 = vmatpush1.bf16.msra.mxu0 %v1152_v19  ;;  %v436_v30 = vsel %vm434_vm7, %v1233_v24, %v1234_v23  ;;  %v472_v38 = vsel %vm470_vm8, %v1248_v27, %v1249_v26 }
 0x1fa   : > { %v1156_v32 = vpack.c.bf16 %v447_v25, %v435_v28  ;;  %v1242_v33 = vpop.permute.xlu1 %1241  ;;  %v465_v34 = vpop.permute.xlu0 %464  ;;  %v1154_v35 = vpack.c.bf16 %v448_v31, %v436_v30 }
 0x1fb   : > { %v1244_v36 = vunpack.i.h.bf16 %v1242_v33  ;;  %v1243_v37 = vunpack.i.l.bf16 %v1242_v33  ;;  %1170 = vmatpush3.bf16.msra.mxu1 %v1169_v29  ;;  %v471_v41 = vsel %vm470_vm8, %v465_v34, %v1248_v27 }
 0x1fc   : > { %1155 = vmatprep.subr.bf16.mxu0 %v1154_v35  ;;  %1171 = vmatprep.subr.bf16.mxu1 %v1273_v45 }
 0x1fd   : > { %v1172_v39 = vpack.c.bf16 %v1249_v26, %v1244_v36  ;;  %v459_v40 = vsel %vm458_vm9, %v1381_v56, %v1243_v37  ;;  %1157 = vmatpush1.bf16.msra.mxu0 %v1156_v32  ;;  %v460_v42 = vsel %vm458_vm9, %v1243_v37, %v1244_v36 }
 0x1fe   : > { %v1160_v43 = vpack.c.bf16 %v471_v41, %v459_v40  ;;  %v479_v44 = vpop.permute.xlu1 %478  ;;  %v481_v46 = vpop.permute.xlu0 %480  ;;  %v1158_v47 = vpack.c.bf16 %v472_v38, %v460_v42 }
 0x1ff   : > { %1173 = vmatpush3.bf16.msra.mxu1 %v1172_v39  ;;  %v484_v45 = vsel %vm482_vm10, %v479_v44, %v481_v46 }
 0x200   : > { %1159 = vmatprep.subr.bf16.mxu0 %v1158_v47  ;;  %1131 = vmatprep.subr.mxu1 %v1265_v4 }
 0x201   : > { %1161 = vmatpush1.bf16.msra.mxu0 %v1160_v43 }
 0x202   : > { %v477_v48 = vpop.permute.xlu1 %476  ;;  %511 = vmatprep.subr.mxu0 %v484_v45 }
 0x203   : > { %v483_v49 = vsel %vm482_vm10, %v477_v48, %v479_v44  ;;  %1132 = vmatpush3.msra.mxu1 %v481_v46 }
 0x204   : > { %1134 = vmatmul.mubr.msk.f32.vlgmr.msra.gmra.mrb[2].mxu1 %vm492_vm11, %v1313_v0 }
 0x205   : > { %512 = vmatpush1.msra.mxu0 %v483_v49  ;;  %735 = vmatprep.mubr.f32.mxu1 %v1265_v4 }
 0x206   : > { %1074 = vmatmul.mubr.msk.f32.vlgmr.msra.gmra.mrb[2].mxu0 %vm492_vm11, %v1313_v0  ;;  %v650_v50 = vpop.permute.xlu1 %649 }
 0x207   : > { %729 = vmatprep.mubr.f32.mxu0 %v1265_v4 }
 0x20a   : > { %v652_v52 = vpop.permute.xlu1 %651 }
 0x20b   : > { %v654_v53 = vsel %vm434_vm7, %v650_v50, %v652_v52 }
 0x20c   : > { %1174 = vmatprep.subr.msk.mxu1 %vm219_vm1, %v654_v53  ;;  %1076 = vmatprep.subr.msk.mxu0 %vm219_vm1, %v654_v53 }
 0x20e   : > { %v641_v57 = vpop.permute.xlu1 %640 }
 0x20f   : > { %v490_v54 = vpop.permute.xlu0 %489 }
 0x212   : > { %v818_v58 = vpop.permute.xlu1 %817 }
 0x213   : > { %v648_v55 = vpop.permute.xlu0 %647 }
 0x214   : > { %v653_v56 = vsel %vm434_vm7, %v648_v55, %v650_v50 }
 0x215   : > { %1175 = vmatpush1.msk.msra.mxu1 %vm219_vm1, %v653_v56  ;;  %1077 = vmatpush1.msk.msra.mxu0 %vm219_vm1, %v653_v56 }
 0x216   : > { %1136 = vmatprep.subr.msk.mxu1 %vm219_vm1, %v652_v52  ;;  %1078 = vmatmul.mubr.msk.f32.vlgmr.msra.gmra.mrb[4].mxu0 %vm216_vm2, %v641_v57 }
 0x217   : > { %v643_v0 = vpop.permute.xlu0 %642  ;;  %898 = vmatprep.mubr.f32.mxu0 %v1265_v4 }
 0x218   : > { %1079 = vmatmul.mubr.msk.f32.vlgmr.msra.gmra.mrb[4].mxu1 %vm216_vm2, %v643_v0 }
 0x219   : > { %1137 = vmatpush3.msk.msra.mxu1 %vm219_vm1, %v652_v52  ;;  %1138 = vmatprep.mubr.msk.f32.mxu1 %vm216_vm2, %v641_v57 }
 0x21b   : > { %v820_v7 = vpop.permute.xlu0 %819 }
 0x21c   : > { %1139 = vmatmul.mubr.msk.f32.vlgmr.msra.gmra.mrb[6].mxu1 %vm216_vm2, %v643_v0 }
 0x21d   : > { %1143 = vmatprep.mubr.msk.f32.mxu1 %vm216_vm2, %v818_v58 }
 0x271   : > { %v988_v11 = vpop.permute.xlu1 %987 }
 0x272   : > { %v992_v10 = vpop.permute.xlu0 %991 }
 0x2d7   : > { %v632_v60 = vpop.f32.mrb[2].mxu1 }
 0x2d8   : > { %v633_v61 = vadd.f32 %v632_v60, %v490_v54  ;;  %v1135_v62 = vpop.f32.mrb[3].mxu1 }
 0x2d9   : > { %v561_v63 = vpop.f32.mrb[2].mxu0 }
 0x2da   : > { %v638_v2 = vmax.f32 %v633_v61, 0.0  ;;  %v562_v3 = vadd.f32 %v561_v63, %v490_v54  ;;  %v563_v5 = vpop.f32.mrb[3].mxu0 }
 0x2db   : > { %v564_v6 = vadd.f32 %v563_v5, %v490_v54 }
 0x2dc   : > { %1141 = vmatprep.subr.msk.mxu1 %vm219_vm1, %v638_v2  ;;  %v636_v9 = vmax.f32 %v562_v3, 0.0 }
 0x2dd   : > { %v637_v8 = vmax.f32 %v564_v6, 0.0  ;;  %1142 = vmatpush3.msk.msra.mxu1 %vm219_vm1, %v638_v2 }
 0x2de   : > { %1144 = vmatmul.mubr.msk.f32.vlgmr.msra.gmra.mrb[6].mxu1 %vm216_vm2, %v820_v7 }
 0x2df   : > { %1083 = vmatprep.subr.msk.mxu0 %vm219_vm1, %v637_v8 }
 0x2e0   : > { %1084 = vmatpush1.msk.msra.mxu0 %vm219_vm1, %v636_v9 }
 0x2e1   : > { %1085 = vmatmul.mubr.msk.f32.vlgmr.msra.gmra.mrb[4].mxu0 %vm216_vm2, %v818_v58 }
 0x2e2   : > { %904 = vmatprep.mubr.f32.mxu0 %v1265_v4 }
 0x2e5   : > { %1086 = vmatmul.mubr.msk.f32.gmra.mrb[6].mxu0 %vm216_vm2, %v820_v7 }
 0x2eb   : > { %v737_v1 = vpop.f32.mrb[4].mxu1 }
 0x2ec   : > { %v739_v51 = vpop.f32.mrb[5].mxu1 }
 0x3b1   : > { %v1145_v12 = vpop.f32.mrb[6].mxu1 }
 0x3b2   : > { %v999_v13 = vadd.f32 %v1145_v12, %v992_v10  ;;  %v977_v14 = vpop.f32.mrb[7].mxu1 }
 0x3b3   : > { %v996_v15 = vadd.f32 %v988_v11, %v977_v14 }
 0x3b4   : > { %v900_v16 = vpop.f32.mrb[4].mxu0  ;;  %1006 = vst.msk [vmem:[%s170_s15 + $0x28] sm:$0xff] %vm1002_vm12, %v999_v13 }
 0x3b5   : > { %v994_v17 = vadd.f32 %v988_v11, %v900_v16  ;;  %v902_v4 = vpop.f32.mrb[5].mxu0  ;;  %1003 = vst.msk [vmem:[%s170_s15 + $0x10] sm:$0xff] %vm1002_vm12, %v996_v15 }
 0x3b6   : > { %v995_v18 = vadd.f32 %v988_v11, %v902_v4 }
 0x3b7   : > { %1000 = vst [vmem:[%s170_s15] sm:$0xff] %v994_v17 }
 0x3b8   : > { %1001 = vst [vmem:[%s170_s15 + $0x8] sm:$0xff] %v995_v18  ;;  %v906_v19 = vpop.f32.mrb[6].mxu0 }
 0x3b9   : > { %v907_v20 = vadd.f32 %v906_v19, %v737_v1  ;;  %v908_v21 = vpop.f32.mrb[7].mxu0 }
 0x3ba   : > { %v909_v22 = vadd.f32 %v908_v21, %v739_v51 }
 0x3bb   : > { %v997_v23 = vadd.f32 %v992_v10, %v907_v20 }
 0x3bc   : > { %v998_v24 = vadd.f32 %v992_v10, %v909_v22 }
 0x3bd   : > { %1004 = vst [vmem:[%s170_s15 + $0x18] sm:$0xff] %v997_v23 }
 0x3be   : > { %1005 = vst [vmem:[%s170_s15 + $0x20] sm:$0xff] %v998_v24 }
 0x3bf PF: > { %s13_s12 = sadd.s32 1, %s1260_s12  }
 0x3c0   : > { %p10_p4 = scmp.ge.s32.totalorder %s13_s12, 4  }
 0x3c2   :  { %12 = sbr.rel (!%p10_p4) target bundleno = 1 (0x1), region = 62 }

</bundles_post_ra>
